<compile_context>
chip_gen: v5e
topology: v5e:2x2
jax: 0.10.0
libtpu: 0.0.40
codegen_flags: <defaults>
</compile_context>

<pallas_src>
import math

import jax
import jax.numpy as jnp
from jax import lax
from jax.experimental import pallas as pl
from jax.experimental.pallas import tpu as pltpu


def _lpu_kernel(x_ref, w_ref, b_ref, o_ref):
    # x_ref: (1, Cin, TT)  w_ref: (Cout, Cin)  b_ref: (Cout, 1)  o_ref: (1, Cout, TT)
    x = x_ref[0]                                   # (Cin, TT) f32
    w = w_ref[...]                                 # (Cout, Cin) f32
    # Pointwise conv == matmul over channels; bf16 operands, f32 accumulation (MXU).
    y = lax.dot_general(
        w.astype(jnp.bfloat16), x.astype(jnp.bfloat16),
        dimension_numbers=(((1,), (0,)), ((), ())),
        preferred_element_type=jnp.float32)        # (Cout, TT)
    o_ref[0] = y + b_ref[...] + x                  # bias + residual (Cout == Cin)


def _pick_lane_tile(T, tt_max=512):
    """Largest tile dividing T: a multiple of 128 if possible, else T itself."""
    if T % 128 != 0:
        return T
    tt = 128
    while tt * 2 <= tt_max and T % (tt * 2) == 0:
        tt *= 2
    return tt


def lpu(x, w, b):
    """x: (B, Cin, T) f32.  w: (Cout, Cin, 1) PyTorch Conv1d weight.  b: (Cout,)."""
    B, Cin, T = x.shape
    Cout = w.shape[0]
    assert Cout == Cin, "LPU residual requires out_channels == in_channels"
    assert w.shape == (Cout, Cin, 1)

    w2d = w.reshape(Cout, Cin)        # drop the kernel_size=1 dim (no transpose needed)
    b2d = b.reshape(Cout, 1)

    tt = _pick_lane_tile(T)
    grid = (B, T // tt)

    cost = pl.CostEstimate(
        flops=2 * B * Cout * Cin * T,
        transcendentals=0,
        bytes_accessed=(B * Cin * T + B * Cout * T) * 4 + (Cout * Cin + Cout) * 4,
    )

    return pl.pallas_call(
        _lpu_kernel,
        out_shape=jax.ShapeDtypeStruct((B, Cout, T), jnp.float32),
        grid=grid,
        in_specs=[
            pl.BlockSpec((1, Cin, tt), lambda bi, ti: (bi, 0, ti)),   # activation tile
            pl.BlockSpec((Cout, Cin), lambda bi, ti: (0, 0)),         # weight (resident)
            pl.BlockSpec((Cout, 1), lambda bi, ti: (0, 0)),           # bias (resident)
        ],
        out_specs=pl.BlockSpec((1, Cout, tt), lambda bi, ti: (bi, 0, ti)),
        compiler_params=pltpu.CompilerParams(
            dimension_semantics=("parallel", "parallel"),
            vmem_limit_bytes=32 * 1024 * 1024,
        ),
        cost_estimate=cost,
    )(x, w2d, b2d)


def lpu_ref(x, w, b):
    """Pure-JAX reference (f32, exact module semantics)."""
    y = jnp.einsum('oi,bit->bot', w[:, :, 0], x, precision=lax.Precision.HIGHEST)
    return y + b[None, :, None] + x


if __name__ == "__main__":
    B, C, T = 2, 16, 256              # (batch, channels, seq); Cout == Cin == C
    key = jax.random.PRNGKey(0)
    kx, kw, kb = jax.random.split(key, 3)

    x = jax.random.normal(kx, (B, C, T), jnp.float32)
    bound = 1.0 / math.sqrt(C * 1)    # PyTorch Conv1d default init (fan_in = Cin * ksize)
    w = jax.random.uniform(kw, (C, C, 1), jnp.float32, -bound, bound)
    b = jax.random.uniform(kb, (C,), jnp.float32, -bound, bound)

    out = jax.block_until_ready(lpu(x, w, b))
    ref = lpu_ref(x, w, b)

    assert out.shape == (B, C, T)
    # bf16 matmul operands (f32 accumulation) -> slightly looser tolerance vs f32 ref
    assert bool(jnp.allclose(out, ref, atol=1e-2, rtol=1e-2)), "mismatch vs JAX reference"

    print("KERNEL_OK")
</pallas_src>

<mosaic_0001>
module attributes {stable_mosaic.version = 11 : i64} {
  func.func @_lpu_kernel(%arg0: i32, %arg1: i32, %arg2: memref<1x16x256xf32, #tpu.memory_space<vmem>>, %arg3: memref<16x16xf32, #tpu.memory_space<vmem>>, %arg4: memref<16x1xf32, #tpu.memory_space<vmem>>, %arg5: memref<1x16x256xf32, #tpu.memory_space<vmem>>) attributes {dimension_semantics = [#tpu.dimension_semantics<parallel>, #tpu.dimension_semantics<parallel>], iteration_bounds = array<i64: 2, 1>, scalar_prefetch = 0 : i64, scratch_operands = 0 : i64, tpu.core_type = #tpu.core_type<tc>, window_params = [{transform_indices = @transform_0, window_bounds = array<i64: 1, 16, 256>}, {pipeline_mode = #tpu.pipeline_mode<synchronous>, transform_indices = @transform_1, window_bounds = array<i64: 16, 16>}, {pipeline_mode = #tpu.pipeline_mode<synchronous>, transform_indices = @transform_2, window_bounds = array<i64: 16, 1>}, {transform_indices = @transform_3, window_bounds = array<i64: 1, 16, 256>}]} {
    %c0 = arith.constant 0 : index
    %c0_0 = arith.constant 0 : index
    %c0_1 = arith.constant 0 : index
    %0 = vector.load %arg2[%c0, %c0_0, %c0_1] : memref<1x16x256xf32, #tpu.memory_space<vmem>>, vector<1x16x256xf32>
    %1 = vector.shape_cast %0 : vector<1x16x256xf32> to vector<16x256xf32>
    %c0_2 = arith.constant 0 : index
    %c0_3 = arith.constant 0 : index
    %2 = vector.load %arg3[%c0_2, %c0_3] : memref<16x16xf32, #tpu.memory_space<vmem>>, vector<16x16xf32>
    %3 = arith.truncf %2 : vector<16x16xf32> to vector<16x16xbf16>
    %4 = arith.truncf %1 : vector<16x256xf32> to vector<16x256xbf16>
    %cst = arith.constant dense<0.000000e+00> : vector<16x256xf32>
    %5 = tpu.matmul %3, %4, %cst {dimension_numbers = #tpu.dot_dimension_numbers<[1], [0], [0], [1], [0, 0, 1, 1], [], []>} : vector<16x16xbf16>, vector<16x256xbf16>, vector<16x256xf32> -> vector<16x256xf32>
    %c0_4 = arith.constant 0 : index
    %c0_5 = arith.constant 0 : index
    %6 = vector.load %arg4[%c0_4, %c0_5] : memref<16x1xf32, #tpu.memory_space<vmem>>, vector<16x1xf32>
    %7 = vector.broadcast %6 : vector<16x1xf32> to vector<16x256xf32>
    %8 = arith.addf %5, %7 : vector<16x256xf32>
    %9 = arith.addf %8, %1 : vector<16x256xf32>
    %c0_6 = arith.constant 0 : index
    %c0_7 = arith.constant 0 : index
    %c0_8 = arith.constant 0 : index
    %10 = vector.load %arg5[%c0_6, %c0_7, %c0_8] : memref<1x16x256xf32, #tpu.memory_space<vmem>>, vector<1x16x256xf32>
    %11 = vector.shape_cast %10 : vector<1x16x256xf32> to vector<16x256xf32>
    %12 = vector.shape_cast %9 : vector<16x256xf32> to vector<1x16x256xf32>
    tpu.vector_store %arg5[%c0_6, %c0_7, %c0_8], %12 {strides = array<i32>} : memref<1x16x256xf32, #tpu.memory_space<vmem>>, vector<1x16x256xf32>,
    return
  }
  func.func @transform_0(%arg0: i32, %arg1: i32) -> (i32, i32, i32) {
    %c0_i32 = arith.constant 0 : i32
    %c0_i32_0 = arith.constant 0 : i32
    return %arg0, %c0_i32, %arg1 : i32, i32, i32
  }
  func.func @transform_1(%arg0: i32, %arg1: i32) -> (i32, i32) {
    %c0_i32 = arith.constant 0 : i32
    %c0_i32_0 = arith.constant 0 : i32
    %c0_i32_1 = arith.constant 0 : i32
    return %c0_i32, %c0_i32_0 : i32, i32
  }
  func.func @transform_2(%arg0: i32, %arg1: i32) -> (i32, i32) {
    %c0_i32 = arith.constant 0 : i32
    %c0_i32_0 = arith.constant 0 : i32
    %c0_i32_1 = arith.constant 0 : i32
    return %c0_i32, %c0_i32_0 : i32, i32
  }
  func.func @transform_3(%arg0: i32, %arg1: i32) -> (i32, i32, i32) {
    %c0_i32 = arith.constant 0 : i32
    %c0_i32_0 = arith.constant 0 : i32
    return %arg0, %c0_i32, %arg1 : i32, i32, i32
  }
}

</mosaic_0001>

<bundles_post_ra>
// kernel: tpu_custom_call.1
= control target key start
LH: loop header
LB: loop body
LE: loop exit
PB: predicated region body
PF: predicated region fallthrough
CT: control target
= control target key end

     0   :  { %8 = vsyncpa [#allocation3], 0  ;;  %s740_s0 = inlined_call_operand.hbm [shape: f32[2,16,256], index: 0, kind: input, shape index: {}]   ;;  %s741_s1 = inlined_call_operand.vmem [shape: f32[16,16], index: 1, kind: input, shape index: {}]   ;;  %s742_s2 = inlined_call_operand.vmem [shape: f32[16,1], index: 2, kind: input, shape index: {}]   ;;  %s743_s3 = inlined_call_operand.hbm [shape: f32[2,16,256], index: 3, kind: output, shape index: {}]  }
   0x1   :  { %10 = vsyncpa [#allocation3 + $0x1], 0 }
   0x2   :  { %11 = vsyncpa [#allocation4], 0 }
   0x3   :  { %13 = vsyncpa [#allocation4 + $0x1], 0  ;;  %s604_s12 = smov 0   ;;  %s606_s13 = smov 0  }
   0x4   :  { %s608_s14 = smov 0   ;;  %s610_s15 = smov 0  }
   0x5   :  { %s612_s16 = smov 0   ;;  %s614_s17 = smov 0  }
   0x6 LB: > { %s378_s18 = sadd.s32 4294967295, %s577_s17   ;;  %s379_s19 = sadd.s32 4294967294, %s577_s17   ;;  %s577_s17 = sphi %s614_s17, %s19_s17   ;;  %s573_s16 = sphi %s612_s16, %s752_s16   ;;  %s569_s15 = sphi %s610_s15, %s751_s15   ;;  %s565_s14 = sphi %s608_s14, %s750_s14   ;;  %s561_s13 = sphi %s606_s13, %s749_s13   ;;  %s557_s12 = sphi %s604_s12, %s748_s12  }
   0x7   : > { %s31_s20 = sadd.s32 1, %s573_s16  ;;  %s40_s21 = sadd.s32 1, %s565_s14 }
   0x8   : > { %p33_p0 = scmp.ge.s32.totalorder %s31_s20, 2  ;;  %p47_p1 = scmp.ne.s32.totalorder %s565_s14, %s561_s13 }
   0x9   : > { %p48_p2 = scmp.eq.s32.totalorder %s577_s17, 0  ;;  %p53_p3 = scmp.ne.s32.totalorder %s561_s13, %s557_s12 }
   0xa   : > { %s754_s20 = smov (%p33_p0, %s31_s20), 0  ;;  %p54_p5 = scmp.eq.s32.totalorder %s378_s18, 0 }
   0xb   : > { %p645_p4 = por %p48_p2, %p47_p1  ;;  %s35_s23 = ssub.s32 %s573_s16, %s754_s20 }
   0xc   : > { %p121_p6 = scmp.eq.s32.totalorder %s378_s18, 1  ;;  %p38_p7 = scmp.eq.s32.totalorder %s35_s23, 0 }
   0xd   : > { %p651_p8 = por %p54_p5, %p53_p3  ;;  %p127_p10 = scmp.eq.s32.totalorder %s379_s19, 1 }
   0xe   : > { %p655_p9 = por %p121_p6, %p47_p1  ;;  %p381_p12 = scmp.ge.s32.totalorder %s577_s17, 2 }
   0xf   : > { %s660_s26 = scalar_select %p38_p7, %s565_s14, %s40_s21  }
  0x10   : > { %p662_p11 = por %p127_p10, %p53_p3  ;;  %p409_p13 = scmp.lt.s32.totalorder %s577_s17, 2 }
  0x11   : > { %s153_s28 = sand.u32 1, %s565_s14   ;;  %s395_s30 = sshll.u32 %s573_s16, 5 }
  0x12   : > { %s382_s29 = sshll.u32 %s153_s28, 5  ;;  %s164_s6 = scalar_lea.hbm %s740_s0, %s395_s30 }
  0x13   : > { %s157_s7 = scalar_lea.vmem [#allocation2], %s382_s29  ;;  %s165_s9 = sshll.u32 %s164_s6, 4  ;;  %s166_s9 = int_to_ptr.hbm [resolvable:$true] %s165_s9 }
  0x14   : > { %s167_s8 = sshll.u32 %s157_s7, 4  ;;  %p402_p0 = pnand %p409_p13, %p645_p4  ;;  %s168_s8 = int_to_ptr.vmem [resolvable:$true] %s167_s8 }
  0x15   : > { %p385_p1 = scmp.ge.s32.totalorder %s577_s17, 1  ;;  %s154_s10 = scalar_lea.sflag [#allocation3], %s153_s28 }
  0x16   : > { %s579_s11 = smov 256   ;;  %s580_s18 = smov 16  }
  0x17   : > { %404 = dma.hbm_to_vmem [thread:$0]  (!%p402_p0), %s166_s9, 512, %s168_s8, %s154_s10, %s579_s11, %s579_s11, %s580_s18  }
  0x18   : > { %p175_p2 = scmp.lt.s32.totalorder %s577_s17, 3 }
  0x1a   : > { %p176_p3 = pnand %p385_p1, %p175_p2 }
  0x1b   : > { %s678_s19 = sand.u32 (!%p176_p3), 1, %s561_s13  }
  0x1c   : > { %179 = sbr.rel (%p176_p3) target bundleno = 183 (0xb7), region = 32  ;;  %s386_s21 = sshll.u32 (!%p176_p3), %s678_s19, 5 }
  0x1d   : > { %s182_s23 = scalar_lea.sflag (!%p176_p3), [#allocation3], %s678_s19  ;;  %s185_s22 = scalar_lea.vmem (!%p176_p3), [#allocation2], %s386_s21 }
  0x21   : > { %548 = dma.done.wait (%p651_p8), %s182_s23, 512  }
  0x22   : > { %550 = vsyncadd (%p651_p8), %s182_s23, 4294966784  ;;  %v581_v0 = vmov 0   ;;  %v212_v1 = vld [vmem:[%s185_s22] sm:$0xff]  ;;  %v214_v2 = vld [vmem:[%s185_s22 + $0x10] sm:$0xff]  ;;  %vm233_vm0 = vcmask 130048   ;;  %s396_s8 = sshll.u32 %s569_s15, 5 }
  0x23   : > { %464 = vset.pattern.permute.xlu0 %v581_v0  ;;  %v213_v3 = vld [vmem:[%s185_s22 + $0x8] sm:$0xff]  ;;  %v219_v4 = vpack.c.bf16 %v214_v2, %v212_v1  ;;  %v215_v5 = vld [vmem:[%s185_s22 + $0x18] sm:$0xff]  ;;  %v216_v6 = vld [vmem:[%s741_s1] sm:$0xff]  ;;  %s208_s9 = scalar_lea.vmem [#allocation5], %s386_s21  ;;  %s287_s18 = scalar_lea.hbm %s743_s3, %s396_s8 }
  0x24   : > { %v217_v7 = vld [vmem:[%s741_s1 + $0x8] sm:$0xff]  ;;  %v220_v8 = vpack.c.bf16 %v215_v5, %v213_v3  ;;  %v221_v10 = vld [vmem:[%s742_s2] sm:$0xff]  ;;  %s288_s23 = sshll.u32 %s208_s9, 4  ;;  %s290_s22 = sshll.u32 %s287_s18, 4  ;;  %s289_s23 = int_to_ptr.vmem [resolvable:$true] %s288_s23  ;;  %s291_s22 = int_to_ptr.hbm [resolvable:$true] %s290_s22 }
  0x25   : > { %v218_v9 = vpack.c.bf16 %v217_v7, %v216_v6  ;;  %244 = vmatpush.bf16.msra.mxu0 %v219_v4  ;;  %225 = vperm.xlu0 %464, %v221_v10   ;;  %v222_v11 = vld [vmem:[%s742_s2 + $0x8] sm:$0xff]  ;;  %s274_s15 = scalar_lea.sflag [#allocation4], %s678_s19  ;;  %s509_s21 = sshra.s32 %s291_s22, 4  ;;  %s510_s21 = int_to_ptr.hbm [resolvable:$true] %s509_s21 }
  0x26   : > { %258 = vmatpush.bf16.msra.mxu1 %v220_v8  ;;  %s511_s28 = scalar_lea.hbm %s510_s21, 32  ;;  %s515_s4 = scalar_lea.hbm %s743_s3, 64 }
  0x27   : > { %p512_p4 = scmp.ne.s32.totalorder %s510_s21, %s511_s28  ;;  %p516_p7 = scmp.lt.s32.totalorder %s510_s21, %s743_s3 }
  0x28   : > { %388 = vmatmul.msk.bf16.vlgmr.msra.gmra.mxu0 %vm233_vm0, %v218_v9  ;;  %p517_p8 = scmp.lt.s32.totalorder %s515_s4, %s511_s28 }
  0x29   : > { %389 = vmatmul.msk.bf16.vlgmr.msra.gmra.mxu1 %vm233_vm0, %v218_v9  ;;  %p513_p5 = pnand %p512_p4, %p655_p9 }
  0x2a   : > { %p518_p10 = por %p517_p8, %p516_p7 }
  0x2b   : > { %p514_p6 = pneg %p513_p5 }
  0x2d   : > { %230 = vperm.xlu0 %464, %v222_v11   ;;  %p519_p13 = pnand %p518_p10, %p514_p6 }
  0x97   : > { %v226_v12 = vpop.permute.xlu0 %225 }
  0x9f   : > { %v231_v19 = vpop.permute.xlu0 %230 }
  0xa5   : > { %v246_v13 = vpop.f32.mrf.mxu0 }
  0xa6   : > { %v247_v14 = vadd.f32 %v246_v13, %v226_v12  ;;  %v260_v15 = vpop.f32.mrf.mxu1 }
  0xa7   : > { %v261_v16 = vadd.f32 %v260_v15, %v226_v12 }
  0xa8   : > { %v265_v17 = vadd.f32 %v247_v14, %v212_v1 }
  0xa9   : > { %v266_v18 = vadd.f32 %v261_v16, %v213_v3 }
  0xaa   : > { %269 = vst [vmem:[%s208_s9] sm:$0xff] %v265_v17 }
  0xab   : > { %270 = vst [vmem:[%s208_s9 + $0x8] sm:$0xff] %v266_v18 }
  0xad   : > { %v248_v20 = vpop.f32.mrf.mxu0 }
  0xae   : > { %v249_v21 = vadd.f32 %v248_v20, %v231_v19  ;;  %v262_v22 = vpop.f32.mrf.mxu1 }
  0xaf   : > { %v263_v23 = vadd.f32 %v262_v22, %v231_v19 }
  0xb0   : > { %v267_v24 = vadd.f32 %v249_v21, %v214_v2 }
  0xb1   : > { %v268_v25 = vadd.f32 %v263_v23, %v215_v5 }
  0xb2   : > { %271 = vst [vmem:[%s208_s9 + $0x10] sm:$0xff] %v267_v24 }
  0xb3   : > { %272 = vst [vmem:[%s208_s9 + $0x18] sm:$0xff] %v268_v25 }
  0xb4   : > { %522 = shalt.err (!%p519_p13)
}
  0xb5   : > { %s582_s19 = smov 256   ;;  %s583_s6 = smov 16  }
  0xb6   : > { %399 = dma.vmem_to_hbm [thread:$0]  (%p655_p9), %s289_s23, 512, %s291_s22, %s274_s15, %s582_s19, %s582_s19, %s583_s6  }
  0xb7 PF: > { %s305_s7 = sand.u32 1, %s557_s12   ;;  %p406_p0 = pnand %p381_p12, %p662_p11 }
  0xb8   : > { %s306_s8 = scalar_lea.sflag [#allocation4], %s305_s7 }
  0xb9   : > { %p407_p1 = pneg %p406_p0 }
  0xbb   : > { %552 = dma.done.wait (%p407_p1), %s306_s8, 512  }
  0xbc   : > { %554 = vsyncadd (%p407_p1), %s306_s8, 4294966784  ;;  %s19_s17 = sadd.s32 1, %s577_s17   ;;  %s748_s12 = smov %s561_s13 }
  0xbd   : > { %p16_p2 = scmp.ge.s32.totalorder %s19_s17, 4   ;;  %s749_s13 = smov %s565_s14 }
  0xbe   : > { %s750_s14 = smov %s660_s26  ;;  %s751_s15 = smov %s573_s16 }
  0xbf   : > { %s752_s16 = smov %s754_s20  ;;  %18 = sbr.rel (!%p16_p2) target bundleno = 6 (0x6), region = 77 }
  0xc4   :  { %312 = vsyncpa [#allocation3], 1 }
  0xc5   :  { %314 = vsyncpa [#allocation3 + $0x1], 1 }
  0xc6   :  { %315 = vsyncpa [#allocation4], 1 }
  0xc7   :  { %317 = vsyncpa [#allocation4 + $0x1], 1 }

</bundles_post_ra>
